<compile_context>
chip_gen: v6e
topology: v6e:2x2x1
jax: 0.10.0
libtpu: 0.0.40
codegen_flags: <defaults>
</compile_context>

<pallas_src>
import functools

import jax
import jax.numpy as jnp
from jax.experimental import pallas as pl
from jax.experimental.pallas import tpu as pltpu

DIM_IN = 2048
DIM_H = 100        # real hidden width
DIM_OUT = 2        # real number of classes
HP = 128           # lane-padded hidden width
OP = 128           # lane-padded logit width
BN_EPS = 1e-5
STAT_ROWS = 8      # sublane-aligned partial-stat tile (row 0 = sum, row 1 = sumsq)


def _round_up(x, m):
    return ((x + m - 1) // m) * m


# --------------------------------------------------------------------------
# Pass 1: h = x @ W1 + b1 per batch tile; emit per-tile partial (sum, sumsq).
# --------------------------------------------------------------------------
def _pass1_kernel(x_ref, w1_ref, b1_ref, h_ref, stats_ref, *,
                  tile_rows, valid_rows, mask_rows):
    i = pl.program_id(0)

    # fc1 on the MXU, f32 accumulation regardless of operand dtype.
    h = jnp.dot(x_ref[...], w1_ref[...], preferred_element_type=jnp.float32)
    h = h + b1_ref[...]                      # (TB, 128) f32
    h_ref[...] = h.astype(h_ref.dtype)       # lane-dense store (bf16 or f32)

    if mask_rows:                            # static: only when batch was padded
        row = i * tile_rows + jax.lax.broadcasted_iota(jnp.int32, h.shape, 0)
        h = jnp.where(row < valid_rows, h, 0.0)

    # Per-tile partial stats (no cross-tile accumulator -> axis can be "parallel").
    s = jnp.sum(h, axis=0, keepdims=True)            # (1, 128)
    ss = jnp.sum(h * h, axis=0, keepdims=True)       # (1, 128)
    pad = jnp.zeros((STAT_ROWS - 2, HP), jnp.float32)
    stats_ref[...] = jnp.concatenate([s, ss, pad], axis=0)   # full (8,128) store


# --------------------------------------------------------------------------
# Pass 2: hbn = h*scale + shift; ReLU; fc2; masked log_softmax.
# --------------------------------------------------------------------------
def _pass2_kernel(h_ref, scale_ref, shift_ref, w2_ref, b2_ref, logit_ref, bn_ref):
    h = h_ref[...].astype(jnp.float32)                       # (TB2, 128)

    hbn = h * scale_ref[...] + shift_ref[...]                # precomputed BN affine
    bn_ref[...] = hbn                                        # second output (detach)

    r = jnp.maximum(hbn, 0.0)
    z = jnp.dot(r, w2_ref[...], preferred_element_type=jnp.float32) + b2_ref[...]

    # log_softmax over the 2 real classes; padded lanes masked out of the
    # reduction (they are sliced away in the wrapper).
    col = jax.lax.broadcasted_iota(jnp.int32, z.shape, 1)
    valid = col < DIM_OUT
    m = jnp.max(jnp.where(valid, z, jnp.float32(-1e30)), axis=1, keepdims=True)
    e = jnp.where(valid, jnp.exp(z - m), 0.0)
    lse = jnp.log(jnp.sum(e, axis=1, keepdims=True)) + m
    logit_ref[...] = z - lse                                 # lane-dense store


# --------------------------------------------------------------------------
# Wrapper
# --------------------------------------------------------------------------
def domain_discriminator(x, w1, b1, gamma, beta, w2, b2, *,
                         fc1_dtype=jnp.bfloat16, batch_tile=None,
                         pass2_batch_tile=2048):
    """x: (B, 2048).  Weights passed pre-transposed: w1 (2048,100), w2 (100,2).

    Returns (log_probs (B, 2), bn_out (B, 100)) — same values as the PyTorch
    module's forward (training-mode BatchNorm).  fc1_dtype=jnp.float32 gives
    strict ~1e-4 fidelity; the bf16 default is the performance path (~1e-2).
    """
    B = x.shape[0]
    assert x.shape == (B, DIM_IN)

    use_bf16 = (fc1_dtype == jnp.bfloat16)
    h_dtype = jnp.bfloat16 if use_bf16 else jnp.float32

    # ---- zero-pad params to lane-dense 128-wide slabs -------------------
    # Padded hidden lanes: w1/b1/gamma/beta = 0  -> h=0, scale=shift=0 -> hbn=0.
    # Padded logit lanes:  w2 cols / b2 = 0      -> masked out of softmax.
    w1p = jnp.pad(w1.astype(jnp.float32), ((0, 0), (0, HP - DIM_H))).astype(fc1_dtype)
    b1p = jnp.pad(b1.astype(jnp.float32), (0, HP - DIM_H)).reshape(1, HP)
    gammap = jnp.pad(gamma.astype(jnp.float32), (0, HP - DIM_H))
    betap = jnp.pad(beta.astype(jnp.float32), (0, HP - DIM_H))
    w2p = jnp.pad(w2.astype(jnp.float32), ((0, HP - DIM_H), (0, OP - DIM_OUT)))
    b2p = jnp.pad(b2.astype(jnp.float32), (0, OP - DIM_OUT)).reshape(1, OP)

    # ---- batch tiling (big tiles to amortize per-step overhead) ---------
    if batch_tile is None:
        batch_tile = 2048 if use_bf16 else 1024     # ~18-19 MiB double-buffered VMEM
    row_align = 16 if use_bf16 else 8
    tb = min(int(batch_tile), _round_up(B, row_align))
    tb = _round_up(tb, row_align)
    b_pad = _round_up(B, tb)
    nb = b_pad // tb

    xp = x if b_pad == B else jnp.pad(x, ((0, b_pad - B), (0, 0)))
    xp = xp.astype(fc1_dtype)

    cparams1 = pltpu.CompilerParams(
        dimension_semantics=("parallel",),          # no cross-tile accumulator -> megacore-ok
        vmem_limit_bytes=32 * 1024 * 1024)          # v5e default scoped limit is 16 MiB

    # ---- pass 1: fc1 + per-tile partial batch stats ----------------------
    h, stats = pl.pallas_call(
        functools.partial(_pass1_kernel, tile_rows=tb, valid_rows=B,
                          mask_rows=(b_pad != B)),
        out_shape=(
            jax.ShapeDtypeStruct((b_pad, HP), h_dtype),             # h
            jax.ShapeDtypeStruct((nb, STAT_ROWS, HP), jnp.float32), # partial sum / sumsq
        ),
        grid_spec=pltpu.PrefetchScalarGridSpec(
            num_scalar_prefetch=0,
            grid=(nb,),
            in_specs=[
                pl.BlockSpec((tb, DIM_IN), lambda i: (i, 0)),   # x (streamed)
                pl.BlockSpec((DIM_IN, HP), lambda i: (0, 0)),   # W1 (resident)
                pl.BlockSpec((1, HP), lambda i: (0, 0)),        # b1
            ],
            out_specs=[
                pl.BlockSpec((tb, HP), lambda i: (i, 0)),              # h
                pl.BlockSpec((None, STAT_ROWS, HP), lambda i: (i, 0, 0)),  # partials
            ],
        ),
        compiler_params=cparams1,
    )(xp, w1p, b1p)

    # ---- tiny XLA reduction + BN affine precompute -----------------------
    ssum = jnp.sum(stats[:, 0, :], axis=0)                  # (HP,)
    ssq = jnp.sum(stats[:, 1, :], axis=0)                   # (HP,)
    inv_b = 1.0 / float(B)
    mean = ssum * inv_b
    var = jnp.maximum(ssq * inv_b - mean * mean, 0.0)       # biased variance, guarded
    scale_v = gammap * jax.lax.rsqrt(var + BN_EPS)          # (HP,)
    shift_v = betap - mean * scale_v                        # (HP,)
    scale = scale_v.reshape(1, HP)
    shift = shift_v.reshape(1, HP)

    # ---- pass-2 tile: decoupled from pass 1, much larger -----------------
    target2 = min(int(pass2_batch_tile), b_pad)
    k = 1
    k_max = max(1, target2 // tb)
    for kk in range(min(k_max, nb), 0, -1):
        if nb % kk == 0:
            k = kk
            break
    tb2 = k * tb
    nb2 = nb // k

    cparams2 = pltpu.CompilerParams(
        dimension_semantics=("parallel",),
        vmem_limit_bytes=32 * 1024 * 1024)

    # ---- pass 2: BN affine + ReLU + fc2 + log_softmax ---------------------
    log_probs_pad, bn_pad = pl.pallas_call(
        _pass2_kernel,
        out_shape=(
            jax.ShapeDtypeStruct((b_pad, OP), jnp.float32),
            jax.ShapeDtypeStruct((b_pad, HP), jnp.float32),
        ),
        grid_spec=pltpu.PrefetchScalarGridSpec(
            num_scalar_prefetch=0,
            grid=(nb2,),
            in_specs=[
                pl.BlockSpec((tb2, HP), lambda i: (i, 0)),      # h (streamed)
                pl.BlockSpec((1, HP), lambda i: (0, 0)),        # scale
                pl.BlockSpec((1, HP), lambda i: (0, 0)),        # shift
                pl.BlockSpec((HP, OP), lambda i: (0, 0)),       # W2 (resident)
                pl.BlockSpec((1, OP), lambda i: (0, 0)),        # b2
            ],
            out_specs=[
                pl.BlockSpec((tb2, OP), lambda i: (i, 0)),      # log_probs (padded)
                pl.BlockSpec((tb2, HP), lambda i: (i, 0)),      # bn activations (padded)
            ],
        ),
        compiler_params=cparams2,
    )(h, scale, shift, w2p, b2p)

    return log_probs_pad[:B, :DIM_OUT], bn_pad[:B, :DIM_H]


# --------------------------------------------------------------------------
# Test harness
# --------------------------------------------------------------------------
def _init_params(key):
    """Deterministic synthetic params matching nn.Linear / nn.BatchNorm1d."""
    k1, k2, k3, k4 = jax.random.split(key, 4)
    lim1 = 1.0 / jnp.sqrt(DIM_IN)
    w1 = jax.random.uniform(k1, (DIM_IN, DIM_H), jnp.float32, -lim1, lim1)
    b1 = jax.random.uniform(k2, (DIM_H,), jnp.float32, -lim1, lim1)
    lim2 = 1.0 / jnp.sqrt(DIM_H)
    w2 = jax.random.uniform(k3, (DIM_H, DIM_OUT), jnp.float32, -lim2, lim2)
    b2 = jax.random.uniform(k4, (DIM_OUT,), jnp.float32, -lim2, lim2)
    gamma = jnp.ones((DIM_H,), jnp.float32)
    beta = jnp.zeros((DIM_H,), jnp.float32)
    return w1, b1, gamma, beta, w2, b2


def _reference(x, w1, b1, gamma, beta, w2, b2,
               fc1_dtype=jnp.float32, h_store_dtype=None):
    xe = x.astype(fc1_dtype).astype(jnp.float32)
    w1e = w1.astype(fc1_dtype).astype(jnp.float32)
    h = xe @ w1e + b1
    mean = jnp.mean(h, axis=0, keepdims=True)
    var = jnp.mean((h - mean) ** 2, axis=0, keepdims=True)
    scale = gamma / jnp.sqrt(var + BN_EPS)
    shift = beta - mean * scale
    h_n = h if h_store_dtype is None else h.astype(h_store_dtype).astype(jnp.float32)
    hbn = h_n * scale + shift
    z = jnp.maximum(hbn, 0.0) @ w2 + b2
    return jax.nn.log_softmax(z, axis=1), hbn


if __name__ == "__main__":
    key = jax.random.PRNGKey(0)
    kx1, kx2, kp = jax.random.split(key, 3)
    params = _init_params(kp)

    # Test 1: B=8, single tile, strict f32 path (exact module semantics).
    x8 = jax.random.normal(kx1, (8, DIM_IN), jnp.float32)
    lp, bn = domain_discriminator(x8, *params, fc1_dtype=jnp.float32)
    jax.block_until_ready((lp, bn))
    rlp, rbn = _reference(x8, *params)
    assert lp.shape == (8, DIM_OUT) and bn.shape == (8, DIM_H)
    assert jnp.allclose(lp, rlp, atol=1e-4, rtol=1e-4)
    assert jnp.allclose(bn, rbn, atol=1e-4, rtol=1e-4)

    # Test 2: B=13 f32 with an 8-row pass-1 tile -> multi-tile partial-stat
    # reduction, masked padded batch rows, and a larger decoupled pass-2 tile.
    x13 = jax.random.normal(kx2, (13, DIM_IN), jnp.float32)
    lp, bn = domain_discriminator(x13, *params, fc1_dtype=jnp.float32, batch_tile=8)
    jax.block_until_ready((lp, bn))
    rlp, rbn = _reference(x13, *params)
    assert lp.shape == (13, DIM_OUT) and bn.shape == (13, DIM_H)
    assert jnp.allclose(lp, rlp, atol=1e-4, rtol=1e-4)
    assert jnp.allclose(bn, rbn, atol=1e-4, rtol=1e-4)

    # Test 3: default performance path (bf16 fc1 operands + bf16 h intermediate).
    # Matches a dtype-consistent reference tightly; matches the full-f32 module
    # to ~1e-2 (keep fc1_dtype=f32 where strict 1e-4 fidelity is required).
    lp16, bn16 = domain_discriminator(x13, *params)
    jax.block_until_ready((lp16, bn16))
    rlp16, rbn16 = _reference(x13, *params, fc1_dtype=jnp.bfloat16,
                              h_store_dtype=jnp.bfloat16)
    assert jnp.allclose(lp16, rlp16, atol=2e-3, rtol=2e-3)
    assert jnp.allclose(bn16, rbn16, atol=2e-3, rtol=2e-3)
    assert jnp.allclose(lp16, rlp, atol=1e-1, rtol=1e-1)
    assert jnp.allclose(bn16, rbn, atol=1e-1, rtol=1e-1)

    print("KERNEL_OK")
</pallas_src>

<mosaic_0001>
module attributes {stable_mosaic.version = 11 : i64} {
  func.func @_pass1_kernel(%arg0: i32, %arg1: memref<8x2048xf32, #tpu.memory_space<vmem>>, %arg2: memref<2048x128xf32, #tpu.memory_space<vmem>>, %arg3: memref<1x128xf32, #tpu.memory_space<vmem>>, %arg4: memref<8x128xf32, #tpu.memory_space<vmem>>, %arg5: memref<1x8x128xf32, #tpu.memory_space<vmem>>) attributes {dimension_semantics = [#tpu.dimension_semantics<parallel>], iteration_bounds = array<i64: 1>, scalar_prefetch = 0 : i64, scratch_operands = 0 : i64, tpu.core_type = #tpu.core_type<tc>, window_params = [{transform_indices = @transform_0, window_bounds = array<i64: 8, 2048>}, {pipeline_mode = #tpu.pipeline_mode<synchronous>, transform_indices = @transform_1, window_bounds = array<i64: 2048, 128>}, {pipeline_mode = #tpu.pipeline_mode<synchronous>, transform_indices = @transform_2, window_bounds = array<i64: 1, 128>}, {transform_indices = @transform_3, window_bounds = array<i64: 8, 128>}, {transform_indices = @transform_4, window_bounds = array<i64: 1, 8, 128>}]} {
    %c0 = arith.constant 0 : index
    %c0_0 = arith.constant 0 : index
    %0 = vector.load %arg1[%c0, %c0_0] : memref<8x2048xf32, #tpu.memory_space<vmem>>, vector<8x2048xf32>
    %c0_1 = arith.constant 0 : index
    %c0_2 = arith.constant 0 : index
    %1 = vector.load %arg2[%c0_1, %c0_2] : memref<2048x128xf32, #tpu.memory_space<vmem>>, vector<2048x128xf32>
    %cst = arith.constant dense<0.000000e+00> : vector<8x128xf32>
    %2 = tpu.matmul %0, %1, %cst {dimension_numbers = #tpu.dot_dimension_numbers<[1], [0], [0], [1], [0, 0, 1, 1], [], []>} : vector<8x2048xf32>, vector<2048x128xf32>, vector<8x128xf32> -> vector<8x128xf32>
    %c0_3 = arith.constant 0 : index
    %c0_4 = arith.constant 0 : index
    %3 = vector.load %arg3[%c0_3, %c0_4] : memref<1x128xf32, #tpu.memory_space<vmem>>, vector<1x128xf32>
    %4 = vector.broadcast %3 : vector<1x128xf32> to vector<8x128xf32>
    %5 = arith.addf %2, %4 : vector<8x128xf32>
    %c0_5 = arith.constant 0 : index
    %c0_6 = arith.constant 0 : index
    %6 = vector.load %arg4[%c0_5, %c0_6] : memref<8x128xf32, #tpu.memory_space<vmem>>, vector<8x128xf32>
    tpu.vector_store %arg4[%c0_5, %c0_6], %5 {strides = array<i32>} : memref<8x128xf32, #tpu.memory_space<vmem>>, vector<8x128xf32>,
    %cst_7 = arith.constant dense<0.000000e+00> : vector<128xf32>
    %7 = vector.multi_reduction <add>, %5, %cst_7 [0] : vector<8x128xf32> to vector<128xf32>
    %8 = vector.shape_cast %7 : vector<128xf32> to vector<1x128xf32>
    %9 = arith.mulf %5, %5 : vector<8x128xf32>
    %cst_8 = arith.constant dense<0.000000e+00> : vector<128xf32>
    %10 = vector.multi_reduction <add>, %9, %cst_8 [0] : vector<8x128xf32> to vector<128xf32>
    %11 = vector.shape_cast %10 : vector<128xf32> to vector<1x128xf32>
    %cst_9 = arith.constant 0.000000e+00 : f32
    %12 = vector.broadcast %cst_9 : f32 to vector<6x128xf32>
    %13 = tpu.concatenate %8, %11, %12 in 0 : vector<1x128xf32>, vector<1x128xf32>, vector<6x128xf32> -> vector<8x128xf32>
    %c0_10 = arith.constant 0 : index
    %c0_11 = arith.constant 0 : index
    %c0_12 = arith.constant 0 : index
    %14 = vector.load %arg5[%c0_10, %c0_11, %c0_12] : memref<1x8x128xf32, #tpu.memory_space<vmem>>, vector<1x8x128xf32>
    %15 = vector.shape_cast %14 : vector<1x8x128xf32> to vector<8x128xf32>
    %16 = vector.shape_cast %13 : vector<8x128xf32> to vector<1x8x128xf32>
    tpu.vector_store %arg5[%c0_10, %c0_11, %c0_12], %16 {strides = array<i32>} : memref<1x8x128xf32, #tpu.memory_space<vmem>>, vector<1x8x128xf32>,
    return
  }
  func.func @transform_0(%arg0: i32) -> (i32, i32) {
    %c0_i32 = arith.constant 0 : i32
    %c0_i32_0 = arith.constant 0 : i32
    return %arg0, %c0_i32 : i32, i32
  }
  func.func @transform_1(%arg0: i32) -> (i32, i32) {
    %c0_i32 = arith.constant 0 : i32
    %c0_i32_0 = arith.constant 0 : i32
    %c0_i32_1 = arith.constant 0 : i32
    return %c0_i32, %c0_i32_0 : i32, i32
  }
  func.func @transform_2(%arg0: i32) -> (i32, i32) {
    %c0_i32 = arith.constant 0 : i32
    %c0_i32_0 = arith.constant 0 : i32
    %c0_i32_1 = arith.constant 0 : i32
    return %c0_i32, %c0_i32_0 : i32, i32
  }
  func.func @transform_3(%arg0: i32) -> (i32, i32) {
    %c0_i32 = arith.constant 0 : i32
    %c0_i32_0 = arith.constant 0 : i32
    return %arg0, %c0_i32 : i32, i32
  }
  func.func @transform_4(%arg0: i32) -> (i32, i32, i32) {
    %c0_i32 = arith.constant 0 : i32
    %c0_i32_0 = arith.constant 0 : i32
    %c0_i32_1 = arith.constant 0 : i32
    return %arg0, %c0_i32, %c0_i32_0 : i32, i32, i32
  }
}

</mosaic_0001>

<bundles_post_ra>
// kernel: tpu_custom_call.1
= control target key start
LH: loop header
LB: loop body
LE: loop exit
PB: predicated region body
PF: predicated region fallthrough
CT: control target
= control target key end

     0   :  { %10 = vsyncpa [#allocation3], 0  ;;  %s1353_s0 = inlined_call_operand.hbm [shape: f32[8,2048], index: 0, kind: input, shape index: {}]   ;;  %s1354_s1 = inlined_call_operand.hbm [shape: f32[2048,128], index: 1, kind: input, shape index: {}]   ;;  %s1355_s2 = inlined_call_operand.vmem [shape: f32[1,128], index: 2, kind: input, shape index: {}]   ;;  %s1356_s3 = inlined_call_operand.hbm [shape: f32[8,128], index: 3, kind: output, shape index: {0}]   ;;  %s1357_s4 = inlined_call_operand.hbm [shape: f32[1,8,128], index: 4, kind: output, shape index: {1}]  }
   0x1   :  { %11 = vsyncpa [#allocation6], 0 }
   0x2   :  { %12 = vsyncpa [#allocation4], 0 }
   0x3   :  { %13 = vsyncpa [#allocation9], 0  ;;  %s1307_s15 = smov [#allocation2]   ;;  %s1308_s17 = smov [#allocation5]  }
   0x4   :  { %s20_s16 = sshll.u32 %s1307_s15, 4  ;;  %s29_s18 = sshll.u32 %s1308_s17, 4  ;;  %s21_s16 = int_to_ptr.vmem [resolvable:$true] %s20_s16  ;;  %s30_s18 = int_to_ptr.vmem [resolvable:$true] %s29_s18 }
   0x5   :  { %s1227_s19 = scalar_lea.vmem %s21_s16, 2048  ;;  %p1232_p1 = scmp.lt.s32.totalorder %s21_s16, %s21_s16 }
   0x6   :  { %p1228_p0 = scmp.ne.s32.totalorder %s21_s16, %s1227_s19  ;;  %p1233_p2 = scmp.lt.s32.totalorder %s1227_s19, %s1227_s19 }
   0x8   :  { %p1234_p3 = por %p1233_p2, %p1232_p1 }
   0xa   :  { %p1235_p4 = pnand %p1234_p3, %p1228_p0 }
   0xc   :  { %1238 = shalt.err (!%p1235_p4)
}
   0xd   :  { %23 = dma.hbm_to_vmem [thread:$0]  %s1353_s0, 2048, %s21_s16, [#allocation3]  }
   0xe   :  { %s1247_s22 = scalar_lea.vmem %s30_s18, 32768  ;;  %p1252_p6 = scmp.lt.s32.totalorder %s30_s18, %s30_s18 }
   0xf   :  { %p1248_p5 = scmp.ne.s32.totalorder %s30_s18, %s1247_s22  ;;  %p1253_p7 = scmp.lt.s32.totalorder %s1247_s22, %s1247_s22 }
  0x11   :  { %p1254_p8 = por %p1253_p7, %p1252_p6 }
  0x13   :  { %p1255_p9 = pnand %p1254_p8, %p1248_p5 }
  0x15   :  { %1258 = shalt.err (!%p1255_p9)
}
  0x16   :  { %s1309_s23 = smov 128   ;;  %s1310_s24 = smov 8  }
  0x17   :  { %35 = dma.hbm_to_vmem [thread:$0]  %s1354_s1, 32768, %s30_s18, [#allocation6], %s1309_s23, %s1309_s23, %s1310_s24  }
  0x18   :  { %1299 = dma.done.wait [#allocation3], 2048  }
  0x19   :  { %1300 = vsyncadd [#allocation3], 4294965248 }
  0x1a   :  { %1301 = dma.done.wait [#allocation6], 32768  }
  0x1b   :  { %1302 = vsyncadd [#allocation6], 4294934528  ;;  %v91_v0 = vld [vmem:[#allocation5 + $0xf8] sm:$0xff]  ;;  %v90_v4 = vld [vmem:[#allocation5 + $0xf0] sm:$0xff] }
  0x1c   :  { %v123_v1 = vld [vmem:[#allocation5 + $0x1f8] sm:$0xff]  ;;  %933 = vmatprep.subr.mxu0 %v91_v0  ;;  %v122_v5 = vld [vmem:[#allocation5 + $0x1f0] sm:$0xff]  ;;  %v89_v8 = vld [vmem:[#allocation5 + $0xe8] sm:$0xff] }
  0x1d   :  { %v75_v2 = vld [vmem:[#allocation5 + $0x78] sm:$0xff]  ;;  %968 = vmatprep.subr.mxu1 %v123_v1  ;;  %v74_v6 = vld [vmem:[#allocation5 + $0x70] sm:$0xff]  ;;  %v121_v9 = vld [vmem:[#allocation5 + $0x1e8] sm:$0xff] }
  0x1e   :  { %v107_v3 = vld [vmem:[#allocation5 + $0x178] sm:$0xff]  ;;  %934 = vmatpush3.msra.mxu0 %v75_v2  ;;  %v106_v7 = vld [vmem:[#allocation5 + $0x170] sm:$0xff]  ;;  %v73_v10 = vld [vmem:[#allocation5 + $0x68] sm:$0xff] }
  0x1f   :  { %969 = vmatpush3.msra.mxu1 %v107_v3  ;;  %935 = vmatprep.subr.mxu0 %v90_v4  ;;  %v105_v11 = vld [vmem:[#allocation5 + $0x168] sm:$0xff]  ;;  %v88_v12 = vld [vmem:[#allocation5 + $0xe0] sm:$0xff]  ;;  %v87_v16 = vld [vmem:[#allocation5 + $0xd8] sm:$0xff] }
  0x20   :  { %970 = vmatprep.subr.mxu1 %v122_v5  ;;  %936 = vmatpush3.msra.mxu0 %v74_v6  ;;  %v120_v13 = vld [vmem:[#allocation5 + $0x1e0] sm:$0xff]  ;;  %v119_v17 = vld [vmem:[#allocation5 + $0x1d8] sm:$0xff]  ;;  %v86_v20 = vld [vmem:[#allocation5 + $0xd0] sm:$0xff] }
  0x21   :  { %971 = vmatpush3.msra.mxu1 %v106_v7  ;;  %937 = vmatprep.subr.mxu0 %v89_v8  ;;  %v72_v14 = vld [vmem:[#allocation5 + $0x60] sm:$0xff]  ;;  %v71_v18 = vld [vmem:[#allocation5 + $0x58] sm:$0xff]  ;;  %v118_v21 = vld [vmem:[#allocation5 + $0x1d0] sm:$0xff] }
  0x22   :  { %972 = vmatprep.subr.mxu1 %v121_v9  ;;  %v104_v15 = vld [vmem:[#allocation5 + $0x160] sm:$0xff]  ;;  %938 = vmatpush3.msra.mxu0 %v73_v10  ;;  %v103_v19 = vld [vmem:[#allocation5 + $0x158] sm:$0xff]  ;;  %v70_v22 = vld [vmem:[#allocation5 + $0x50] sm:$0xff] }
  0x23   :  { %973 = vmatpush3.msra.mxu1 %v105_v11  ;;  %939 = vmatprep.subr.mxu0 %v88_v12  ;;  %v102_v23 = vld [vmem:[#allocation5 + $0x150] sm:$0xff]  ;;  %v85_v24 = vld [vmem:[#allocation5 + $0xc8] sm:$0xff]  ;;  %v84_v28 = vld [vmem:[#allocation5 + $0xc0] sm:$0xff] }
  0x24   :  { %974 = vmatprep.subr.mxu1 %v120_v13  ;;  %940 = vmatpush3.msra.mxu0 %v72_v14  ;;  %v117_v25 = vld [vmem:[#allocation5 + $0x1c8] sm:$0xff]  ;;  %v116_v29 = vld [vmem:[#allocation5 + $0x1c0] sm:$0xff]  ;;  %v83_v32 = vld [vmem:[#allocation5 + $0xb8] sm:$0xff] }
  0x25   :  { %975 = vmatpush3.msra.mxu1 %v104_v15  ;;  %941 = vmatprep.subr.mxu0 %v87_v16  ;;  %v69_v26 = vld [vmem:[#allocation5 + $0x48] sm:$0xff]  ;;  %v68_v30 = vld [vmem:[#allocation5 + $0x40] sm:$0xff]  ;;  %v115_v33 = vld [vmem:[#allocation5 + $0x1b8] sm:$0xff] }
  0x26   :  { %976 = vmatprep.subr.mxu1 %v119_v17  ;;  %942 = vmatpush3.msra.mxu0 %v71_v18  ;;  %v101_v27 = vld [vmem:[#allocation5 + $0x148] sm:$0xff]  ;;  %v100_v31 = vld [vmem:[#allocation5 + $0x140] sm:$0xff]  ;;  %v67_v34 = vld [vmem:[#allocation5 + $0x38] sm:$0xff] }
  0x27   :  { %977 = vmatpush3.msra.mxu1 %v103_v19  ;;  %943 = vmatprep.subr.mxu0 %v86_v20  ;;  %v99_v35 = vld [vmem:[#allocation5 + $0x138] sm:$0xff]  ;;  %v82_v36 = vld [vmem:[#allocation5 + $0xb0] sm:$0xff]  ;;  %v81_v40 = vld [vmem:[#allocation5 + $0xa8] sm:$0xff] }
  0x28   :  { %978 = vmatprep.subr.mxu1 %v118_v21  ;;  %944 = vmatpush3.msra.mxu0 %v70_v22  ;;  %v114_v37 = vld [vmem:[#allocation5 + $0x1b0] sm:$0xff]  ;;  %v113_v41 = vld [vmem:[#allocation5 + $0x1a8] sm:$0xff]  ;;  %v80_v44 = vld [vmem:[#allocation5 + $0xa0] sm:$0xff] }
  0x29   :  { %979 = vmatpush3.msra.mxu1 %v102_v23  ;;  %945 = vmatprep.subr.mxu0 %v85_v24  ;;  %v66_v38 = vld [vmem:[#allocation5 + $0x30] sm:$0xff]  ;;  %v65_v42 = vld [vmem:[#allocation5 + $0x28] sm:$0xff]  ;;  %v112_v45 = vld [vmem:[#allocation5 + $0x1a0] sm:$0xff] }
  0x2a   :  { %980 = vmatprep.subr.mxu1 %v117_v25  ;;  %946 = vmatpush3.msra.mxu0 %v69_v26  ;;  %v98_v39 = vld [vmem:[#allocation5 + $0x130] sm:$0xff]  ;;  %v97_v43 = vld [vmem:[#allocation5 + $0x128] sm:$0xff]  ;;  %v64_v46 = vld [vmem:[#allocation5 + $0x20] sm:$0xff] }
  0x2b   :  { %981 = vmatpush3.msra.mxu1 %v101_v27  ;;  %947 = vmatprep.subr.mxu0 %v84_v28  ;;  %v96_v47 = vld [vmem:[#allocation5 + $0x120] sm:$0xff]  ;;  %v79_v48 = vld [vmem:[#allocation5 + $0x98] sm:$0xff]  ;;  %v78_v52 = vld [vmem:[#allocation5 + $0x90] sm:$0xff] }
  0x2c   :  { %982 = vmatprep.subr.mxu1 %v116_v29  ;;  %948 = vmatpush3.msra.mxu0 %v68_v30  ;;  %v111_v49 = vld [vmem:[#allocation5 + $0x198] sm:$0xff]  ;;  %v110_v53 = vld [vmem:[#allocation5 + $0x190] sm:$0xff]  ;;  %v77_v56 = vld [vmem:[#allocation5 + $0x88] sm:$0xff] }
  0x2d   :  { %983 = vmatpush3.msra.mxu1 %v100_v31  ;;  %949 = vmatprep.subr.mxu0 %v83_v32  ;;  %v63_v50 = vld [vmem:[#allocation5 + $0x18] sm:$0xff]  ;;  %v62_v54 = vld [vmem:[#allocation5 + $0x10] sm:$0xff]  ;;  %v109_v57 = vld [vmem:[#allocation5 + $0x188] sm:$0xff] }
  0x2e   :  { %984 = vmatprep.subr.mxu1 %v115_v33  ;;  %950 = vmatpush3.msra.mxu0 %v67_v34  ;;  %v95_v51 = vld [vmem:[#allocation5 + $0x118] sm:$0xff]  ;;  %v94_v55 = vld [vmem:[#allocation5 + $0x110] sm:$0xff]  ;;  %v61_v58 = vld [vmem:[#allocation5 + $0x8] sm:$0xff] }
  0x2f   :  { %985 = vmatpush3.msra.mxu1 %v99_v35  ;;  %951 = vmatprep.subr.mxu0 %v82_v36  ;;  %v93_v59 = vld [vmem:[#allocation5 + $0x108] sm:$0xff]  ;;  %v76_v60 = vld [vmem:[#allocation5 + $0x80] sm:$0xff]  ;;  %v47_v2 = vld [vmem:[#allocation2 + $0x18] sm:$0xff] }
  0x30   :  { %986 = vmatprep.subr.mxu1 %v114_v37  ;;  %952 = vmatpush3.msra.mxu0 %v66_v38  ;;  %v108_v61 = vld [vmem:[#allocation5 + $0x180] sm:$0xff]  ;;  %v45_v63 = vld [vmem:[#allocation2 + $0x8] sm:$0xff]  ;;  %v155_v3 = vld [vmem:[#allocation5 + $0x2f8] sm:$0xff] }
  0x31   :  { %987 = vmatpush3.msra.mxu1 %v98_v39  ;;  %953 = vmatprep.subr.mxu0 %v81_v40  ;;  %v60_v62 = vld [vmem:[#allocation5] sm:$0xff]  ;;  %v187_v4 = vld [vmem:[#allocation5 + $0x3f8] sm:$0xff]  ;;  %v46_v5 = vld [vmem:[#allocation2 + $0x10] sm:$0xff] }
  0x32   :  { %988 = vmatprep.subr.mxu1 %v113_v41  ;;  %954 = vmatpush3.msra.mxu0 %v65_v42  ;;  %v92_v0 = vld [vmem:[#allocation5 + $0x100] sm:$0xff]  ;;  %v139_v6 = vld [vmem:[#allocation5 + $0x278] sm:$0xff]  ;;  %v154_v8 = vld [vmem:[#allocation5 + $0x2f0] sm:$0xff] }
  0x33   :  { %989 = vmatpush3.msra.mxu1 %v97_v43  ;;  %955 = vmatprep.subr.mxu0 %v80_v44  ;;  %v44_v1 = vld [vmem:[#allocation2] sm:$0xff]  ;;  %v171_v7 = vld [vmem:[#allocation5 + $0x378] sm:$0xff]  ;;  %v186_v9 = vld [vmem:[#allocation5 + $0x3f0] sm:$0xff] }
  0x34   :  { %990 = vmatprep.subr.mxu1 %v112_v45  ;;  %956 = vmatpush3.msra.mxu0 %v64_v46  ;;  %v138_v10 = vld [vmem:[#allocation5 + $0x270] sm:$0xff]  ;;  %v153_v12 = vld [vmem:[#allocation5 + $0x2e8] sm:$0xff]  ;;  %v152_v16 = vld [vmem:[#allocation5 + $0x2e0] sm:$0xff] }
  0x35   :  { %991 = vmatpush3.msra.mxu1 %v96_v47  ;;  %957 = vmatprep.subr.mxu0 %v79_v48  ;;  %v170_v11 = vld [vmem:[#allocation5 + $0x370] sm:$0xff]  ;;  %v185_v13 = vld [vmem:[#allocation5 + $0x3e8] sm:$0xff]  ;;  %v184_v17 = vld [vmem:[#allocation5 + $0x3e0] sm:$0xff] }
  0x36   :  { %992 = vmatprep.subr.mxu1 %v111_v49  ;;  %958 = vmatpush3.msra.mxu0 %v63_v50  ;;  %v137_v14 = vld [vmem:[#allocation5 + $0x268] sm:$0xff]  ;;  %v136_v18 = vld [vmem:[#allocation5 + $0x260] sm:$0xff]  ;;  %v151_v20 = vld [vmem:[#allocation5 + $0x2d8] sm:$0xff] }
  0x37   :  { %993 = vmatpush3.msra.mxu1 %v95_v51  ;;  %959 = vmatprep.subr.mxu0 %v78_v52  ;;  %v169_v15 = vld [vmem:[#allocation5 + $0x368] sm:$0xff]  ;;  %v168_v19 = vld [vmem:[#allocation5 + $0x360] sm:$0xff]  ;;  %v183_v21 = vld [vmem:[#allocation5 + $0x3d8] sm:$0xff] }
  0x38   :  { %994 = vmatprep.subr.mxu1 %v110_v53  ;;  %960 = vmatpush3.msra.mxu0 %v62_v54  ;;  %v135_v22 = vld [vmem:[#allocation5 + $0x258] sm:$0xff]  ;;  %v150_v24 = vld [vmem:[#allocation5 + $0x2d0] sm:$0xff]  ;;  %v149_v28 = vld [vmem:[#allocation5 + $0x2c8] sm:$0xff] }
  0x39   :  { %995 = vmatpush3.msra.mxu1 %v94_v55  ;;  %961 = vmatprep.subr.mxu0 %v77_v56  ;;  %v167_v23 = vld [vmem:[#allocation5 + $0x358] sm:$0xff]  ;;  %v182_v25 = vld [vmem:[#allocation5 + $0x3d0] sm:$0xff]  ;;  %v181_v29 = vld [vmem:[#allocation5 + $0x3c8] sm:$0xff] }
  0x3a   :  { %996 = vmatprep.subr.mxu1 %v109_v57  ;;  %962 = vmatpush3.msra.mxu0 %v61_v58  ;;  %v134_v26 = vld [vmem:[#allocation5 + $0x250] sm:$0xff]  ;;  %v133_v30 = vld [vmem:[#allocation5 + $0x248] sm:$0xff]  ;;  %v148_v32 = vld [vmem:[#allocation5 + $0x2c0] sm:$0xff] }
  0x3b   :  { %997 = vmatpush3.msra.mxu1 %v93_v59  ;;  %963 = vmatprep.subr.mxu0 %v76_v60  ;;  %v166_v27 = vld [vmem:[#allocation5 + $0x350] sm:$0xff]  ;;  %v165_v31 = vld [vmem:[#allocation5 + $0x348] sm:$0xff]  ;;  %v180_v33 = vld [vmem:[#allocation5 + $0x3c0] sm:$0xff] }
  0x3c   :  { %998 = vmatprep.subr.mxu1 %v108_v61  ;;  %964 = vmatpush3.msra.mxu0 %v60_v62  ;;  %v132_v34 = vld [vmem:[#allocation5 + $0x240] sm:$0xff]  ;;  %v147_v36 = vld [vmem:[#allocation5 + $0x2b8] sm:$0xff]  ;;  %v146_v40 = vld [vmem:[#allocation5 + $0x2b0] sm:$0xff] }
  0x3d   :  { %387 = vmatprep.mubr.f32.mxu0 %v45_v63  ;;  %999 = vmatpush3.msra.mxu1 %v92_v0  ;;  %v164_v35 = vld [vmem:[#allocation5 + $0x340] sm:$0xff]  ;;  %v179_v37 = vld [vmem:[#allocation5 + $0x3b8] sm:$0xff]  ;;  %v178_v41 = vld [vmem:[#allocation5 + $0x3b0] sm:$0xff] }
  0x3e   :  { %388 = vmatmul.mubr.f32.vlgmr.msra.gmra.mxu0 %v44_v1  ;;  %457 = vmatprep.mubr.f32.mxu1 %v47_v2  ;;  %v131_v38 = vld [vmem:[#allocation5 + $0x238] sm:$0xff]  ;;  %v130_v42 = vld [vmem:[#allocation5 + $0x230] sm:$0xff]  ;;  %v145_v44 = vld [vmem:[#allocation5 + $0x2a8] sm:$0xff] }
  0x3f   :  { %1003 = vmatprep.subr.mxu0 %v155_v3  ;;  %1038 = vmatprep.subr.mxu1 %v187_v4  ;;  %v163_v39 = vld [vmem:[#allocation5 + $0x338] sm:$0xff]  ;;  %v162_v43 = vld [vmem:[#allocation5 + $0x330] sm:$0xff]  ;;  %v177_v45 = vld [vmem:[#allocation5 + $0x3a8] sm:$0xff] }
  0x40   :  { %458 = vmatmul.mubr.f32.vlgmr.msra.gmra.mxu1 %v46_v5  ;;  %1004 = vmatpush3.msra.mxu0 %v139_v6  ;;  %v129_v46 = vld [vmem:[#allocation5 + $0x228] sm:$0xff]  ;;  %v144_v48 = vld [vmem:[#allocation5 + $0x2a0] sm:$0xff]  ;;  %v143_v52 = vld [vmem:[#allocation5 + $0x298] sm:$0xff] }
  0x41   :  { %1039 = vmatpush3.msra.mxu1 %v171_v7  ;;  %1005 = vmatprep.subr.mxu0 %v154_v8  ;;  %v161_v47 = vld [vmem:[#allocation5 + $0x328] sm:$0xff]  ;;  %v176_v49 = vld [vmem:[#allocation5 + $0x3a0] sm:$0xff]  ;;  %v175_v53 = vld [vmem:[#allocation5 + $0x398] sm:$0xff] }
  0x42   :  { %1040 = vmatprep.subr.mxu1 %v186_v9  ;;  %1006 = vmatpush3.msra.mxu0 %v138_v10  ;;  %v128_v50 = vld [vmem:[#allocation5 + $0x220] sm:$0xff]  ;;  %v127_v54 = vld [vmem:[#allocation5 + $0x218] sm:$0xff]  ;;  %v142_v56 = vld [vmem:[#allocation5 + $0x290] sm:$0xff] }
  0x43   :  { %1041 = vmatpush3.msra.mxu1 %v170_v11  ;;  %1007 = vmatprep.subr.mxu0 %v153_v12  ;;  %v160_v51 = vld [vmem:[#allocation5 + $0x320] sm:$0xff]  ;;  %v159_v55 = vld [vmem:[#allocation5 + $0x318] sm:$0xff]  ;;  %v174_v57 = vld [vmem:[#allocation5 + $0x390] sm:$0xff] }
  0x44   :  { %1042 = vmatprep.subr.mxu1 %v185_v13  ;;  %1008 = vmatpush3.msra.mxu0 %v137_v14  ;;  %v126_v58 = vld [vmem:[#allocation5 + $0x210] sm:$0xff]  ;;  %v141_v60 = vld [vmem:[#allocation5 + $0x288] sm:$0xff]  ;;  %v140_v0 = vld [vmem:[#allocation5 + $0x280] sm:$0xff] }
  0x45   :  { %1043 = vmatpush3.msra.mxu1 %v169_v15  ;;  %1009 = vmatprep.subr.mxu0 %v152_v16  ;;  %v158_v59 = vld [vmem:[#allocation5 + $0x310] sm:$0xff]  ;;  %v173_v61 = vld [vmem:[#allocation5 + $0x388] sm:$0xff]  ;;  %v172_v1 = vld [vmem:[#allocation5 + $0x380] sm:$0xff] }
  0x46   :  { %1044 = vmatprep.subr.mxu1 %v184_v17  ;;  %1010 = vmatpush3.msra.mxu0 %v136_v18  ;;  %v125_v62 = vld [vmem:[#allocation5 + $0x208] sm:$0xff]  ;;  %v124_v2 = vld [vmem:[#allocation5 + $0x200] sm:$0xff]  ;;  %v51_v6 = vld [vmem:[#allocation2 + $0x38] sm:$0xff] }
  0x47   :  { %1045 = vmatpush3.msra.mxu1 %v168_v19  ;;  %1011 = vmatprep.subr.mxu0 %v151_v20  ;;  %v157_v63 = vld [vmem:[#allocation5 + $0x308] sm:$0xff]  ;;  %v156_v4 = vld [vmem:[#allocation5 + $0x300] sm:$0xff]  ;;  %v219_v7 = vld [vmem:[#allocation5 + $0x4f8] sm:$0xff] }
  0x48   :  { %1046 = vmatprep.subr.mxu1 %v183_v21  ;;  %1012 = vmatpush3.msra.mxu0 %v135_v22  ;;  %v49_v3 = vld [vmem:[#allocation2 + $0x28] sm:$0xff]  ;;  %v48_v5 = vld [vmem:[#allocation2 + $0x20] sm:$0xff]  ;;  %v251_v8 = vld [vmem:[#allocation5 + $0x5f8] sm:$0xff] }
  0x49   :  { %1047 = vmatpush3.msra.mxu1 %v167_v23  ;;  %1013 = vmatprep.subr.mxu0 %v150_v24  ;;  %v50_v9 = vld [vmem:[#allocation2 + $0x30] sm:$0xff]  ;;  %v203_v10 = vld [vmem:[#allocation5 + $0x478] sm:$0xff]  ;;  %v217_v16 = vld [vmem:[#allocation5 + $0x4e8] sm:$0xff] }
  0x4a   :  { %1048 = vmatprep.subr.mxu1 %v182_v25  ;;  %1014 = vmatpush3.msra.mxu0 %v134_v26  ;;  %v235_v11 = vld [vmem:[#allocation5 + $0x578] sm:$0xff]  ;;  %v218_v12 = vld [vmem:[#allocation5 + $0x4f0] sm:$0xff]  ;;  %v249_v17 = vld [vmem:[#allocation5 + $0x5e8] sm:$0xff] }
  0x4b   :  { %1049 = vmatpush3.msra.mxu1 %v166_v27  ;;  %1015 = vmatprep.subr.mxu0 %v149_v28  ;;  %v250_v13 = vld [vmem:[#allocation5 + $0x5f0] sm:$0xff]  ;;  %v201_v18 = vld [vmem:[#allocation5 + $0x468] sm:$0xff]  ;;  %v216_v20 = vld [vmem:[#allocation5 + $0x4e0] sm:$0xff] }
  0x4c   :  { %1050 = vmatprep.subr.mxu1 %v181_v29  ;;  %1016 = vmatpush3.msra.mxu0 %v133_v30  ;;  %v202_v14 = vld [vmem:[#allocation5 + $0x470] sm:$0xff]  ;;  %v233_v19 = vld [vmem:[#allocation5 + $0x568] sm:$0xff]  ;;  %v248_v21 = vld [vmem:[#allocation5 + $0x5e0] sm:$0xff] }
  0x4d   :  { %1051 = vmatpush3.msra.mxu1 %v165_v31  ;;  %1017 = vmatprep.subr.mxu0 %v148_v32  ;;  %v234_v15 = vld [vmem:[#allocation5 + $0x570] sm:$0xff]  ;;  %v200_v22 = vld [vmem:[#allocation5 + $0x460] sm:$0xff]  ;;  %v215_v24 = vld [vmem:[#allocation5 + $0x4d8] sm:$0xff] }
  0x4e   :  { %1052 = vmatprep.subr.mxu1 %v180_v33  ;;  %1018 = vmatpush3.msra.mxu0 %v132_v34  ;;  %v232_v23 = vld [vmem:[#allocation5 + $0x560] sm:$0xff]  ;;  %v247_v25 = vld [vmem:[#allocation5 + $0x5d8] sm:$0xff]  ;;  %v214_v28 = vld [vmem:[#allocation5 + $0x4d0] sm:$0xff] }
  0x4f   :  { %1053 = vmatpush3.msra.mxu1 %v164_v35  ;;  %1019 = vmatprep.subr.mxu0 %v147_v36  ;;  %v199_v26 = vld [vmem:[#allocation5 + $0x458] sm:$0xff]  ;;  %v246_v29 = vld [vmem:[#allocation5 + $0x5d0] sm:$0xff]  ;;  %v213_v32 = vld [vmem:[#allocation5 + $0x4c8] sm:$0xff] }
  0x50   :  { %1054 = vmatprep.subr.mxu1 %v179_v37  ;;  %1020 = vmatpush3.msra.mxu0 %v131_v38  ;;  %v231_v27 = vld [vmem:[#allocation5 + $0x558] sm:$0xff]  ;;  %v198_v30 = vld [vmem:[#allocation5 + $0x450] sm:$0xff]  ;;  %v245_v33 = vld [vmem:[#allocation5 + $0x5c8] sm:$0xff] }
  0x51   :  { %1055 = vmatpush3.msra.mxu1 %v163_v39  ;;  %1021 = vmatprep.subr.mxu0 %v146_v40  ;;  %v230_v31 = vld [vmem:[#allocation5 + $0x550] sm:$0xff]  ;;  %v197_v34 = vld [vmem:[#allocation5 + $0x448] sm:$0xff]  ;;  %v212_v36 = vld [vmem:[#allocation5 + $0x4c0] sm:$0xff] }
  0x52   :  { %1056 = vmatprep.subr.mxu1 %v178_v41  ;;  %1022 = vmatpush3.msra.mxu0 %v130_v42  ;;  %v229_v35 = vld [vmem:[#allocation5 + $0x548] sm:$0xff]  ;;  %v244_v37 = vld [vmem:[#allocation5 + $0x5c0] sm:$0xff]  ;;  %v211_v40 = vld [vmem:[#allocation5 + $0x4b8] sm:$0xff] }
  0x53   :  { %1057 = vmatpush3.msra.mxu1 %v162_v43  ;;  %1023 = vmatprep.subr.mxu0 %v145_v44  ;;  %v196_v38 = vld [vmem:[#allocation5 + $0x440] sm:$0xff]  ;;  %v243_v41 = vld [vmem:[#allocation5 + $0x5b8] sm:$0xff]  ;;  %v210_v44 = vld [vmem:[#allocation5 + $0x4b0] sm:$0xff] }
  0x54   :  { %1058 = vmatprep.subr.mxu1 %v177_v45  ;;  %1024 = vmatpush3.msra.mxu0 %v129_v46  ;;  %v228_v39 = vld [vmem:[#allocation5 + $0x540] sm:$0xff]  ;;  %v195_v42 = vld [vmem:[#allocation5 + $0x438] sm:$0xff]  ;;  %v242_v45 = vld [vmem:[#allocation5 + $0x5b0] sm:$0xff] }
  0x55   :  { %1059 = vmatpush3.msra.mxu1 %v161_v47  ;;  %1025 = vmatprep.subr.mxu0 %v144_v48  ;;  %v227_v43 = vld [vmem:[#allocation5 + $0x538] sm:$0xff]  ;;  %v194_v46 = vld [vmem:[#allocation5 + $0x430] sm:$0xff]  ;;  %v209_v48 = vld [vmem:[#allocation5 + $0x4a8] sm:$0xff] }
  0x56   :  { %1060 = vmatprep.subr.mxu1 %v176_v49  ;;  %1026 = vmatpush3.msra.mxu0 %v128_v50  ;;  %v226_v47 = vld [vmem:[#allocation5 + $0x530] sm:$0xff]  ;;  %v241_v49 = vld [vmem:[#allocation5 + $0x5a8] sm:$0xff] }
  0x57   :  { %1061 = vmatpush3.msra.mxu1 %v160_v51  ;;  %1027 = vmatprep.subr.mxu0 %v143_v52  ;;  %v193_v50 = vld [vmem:[#allocation5 + $0x428] sm:$0xff]  ;;  %v208_v52 = vld [vmem:[#allocation5 + $0x4a0] sm:$0xff] }
  0x58   :  { %1062 = vmatprep.subr.mxu1 %v175_v53  ;;  %1028 = vmatpush3.msra.mxu0 %v127_v54  ;;  %v225_v51 = vld [vmem:[#allocation5 + $0x528] sm:$0xff]  ;;  %v240_v53 = vld [vmem:[#allocation5 + $0x5a0] sm:$0xff] }
  0x59   :  { %1063 = vmatpush3.msra.mxu1 %v159_v55  ;;  %1029 = vmatprep.subr.mxu0 %v142_v56  ;;  %v192_v54 = vld [vmem:[#allocation5 + $0x420] sm:$0xff]  ;;  %v207_v56 = vld [vmem:[#allocation5 + $0x498] sm:$0xff] }
  0x5a   :  { %1064 = vmatprep.subr.mxu1 %v174_v57  ;;  %1030 = vmatpush3.msra.mxu0 %v126_v58  ;;  %v224_v55 = vld [vmem:[#allocation5 + $0x520] sm:$0xff]  ;;  %v239_v57 = vld [vmem:[#allocation5 + $0x598] sm:$0xff] }
  0x5b   :  { %1065 = vmatpush3.msra.mxu1 %v158_v59  ;;  %1031 = vmatprep.subr.mxu0 %v141_v60  ;;  %v191_v58 = vld [vmem:[#allocation5 + $0x418] sm:$0xff]  ;;  %v206_v60 = vld [vmem:[#allocation5 + $0x490] sm:$0xff] }
  0x5c   :  { %1066 = vmatprep.subr.mxu1 %v173_v61  ;;  %1032 = vmatpush3.msra.mxu0 %v125_v62  ;;  %v223_v59 = vld [vmem:[#allocation5 + $0x518] sm:$0xff]  ;;  %v238_v61 = vld [vmem:[#allocation5 + $0x590] sm:$0xff] }
  0x5d   :  { %1067 = vmatpush3.msra.mxu1 %v157_v63  ;;  %1033 = vmatprep.subr.mxu0 %v140_v0  ;;  %v190_v62 = vld [vmem:[#allocation5 + $0x410] sm:$0xff]  ;;  %v205_v0 = vld [vmem:[#allocation5 + $0x488] sm:$0xff] }
  0x5e   :  { %1068 = vmatprep.subr.mxu1 %v172_v1  ;;  %1034 = vmatpush3.msra.mxu0 %v124_v2  ;;  %v222_v63 = vld [vmem:[#allocation5 + $0x510] sm:$0xff]  ;;  %v237_v1 = vld [vmem:[#allocation5 + $0x588] sm:$0xff] }
  0x5f   :  { %527 = vmatprep.mubr.f32.mxu0 %v49_v3  ;;  %1069 = vmatpush3.msra.mxu1 %v156_v4  ;;  %v189_v2 = vld [vmem:[#allocation5 + $0x408] sm:$0xff]  ;;  %v204_v4 = vld [vmem:[#allocation5 + $0x480] sm:$0xff] }
  0x60   :  { %528 = vmatmul.mubr.f32.vlgmr.msra.gmra.mxu0 %v48_v5  ;;  %597 = vmatprep.mubr.f32.mxu1 %v51_v6  ;;  %v221_v3 = vld [vmem:[#allocation5 + $0x508] sm:$0xff]  ;;  %v236_v5 = vld [vmem:[#allocation5 + $0x580] sm:$0xff] }
  0x61   :  { %1073 = vmatprep.subr.mxu0 %v219_v7  ;;  %1108 = vmatprep.subr.mxu1 %v251_v8  ;;  %v188_v6 = vld [vmem:[#allocation5 + $0x400] sm:$0xff]  ;;  %v53_v7 = vld [vmem:[#allocation2 + $0x48] sm:$0xff] }
  0x62   :  { %598 = vmatmul.mubr.f32.vlgmr.msra.gmra.mxu1 %v50_v9  ;;  %1074 = vmatpush3.msra.mxu0 %v203_v10  ;;  %v220_v8 = vld [vmem:[#allocation5 + $0x500] sm:$0xff]  ;;  %v55_v10 = vld [vmem:[#allocation2 + $0x58] sm:$0xff] }
  0x63   :  { %1109 = vmatpush3.msra.mxu1 %v235_v11  ;;  %1075 = vmatprep.subr.mxu0 %v218_v12  ;;  %v52_v9 = vld [vmem:[#allocation2 + $0x40] sm:$0xff]  ;;  %v283_v11 = vld [vmem:[#allocation5 + $0x6f8] sm:$0xff] }
  0x64   :  { %1110 = vmatprep.subr.mxu1 %v250_v13  ;;  %1076 = vmatpush3.msra.mxu0 %v202_v14  ;;  %v315_v12 = vld [vmem:[#allocation5 + $0x7f8] sm:$0xff]  ;;  %v54_v13 = vld [vmem:[#allocation2 + $0x50] sm:$0xff] }
  0x65   :  { %1111 = vmatpush3.msra.mxu1 %v234_v15  ;;  %1077 = vmatprep.subr.mxu0 %v217_v16  ;;  %v267_v14 = vld [vmem:[#allocation5 + $0x678] sm:$0xff]  ;;  %v282_v16 = vld [vmem:[#allocation5 + $0x6f0] sm:$0xff] }
  0x66   :  { %1112 = vmatprep.subr.mxu1 %v249_v17  ;;  %1078 = vmatpush3.msra.mxu0 %v201_v18  ;;  %v299_v15 = vld [vmem:[#allocation5 + $0x778] sm:$0xff]  ;;  %v314_v17 = vld [vmem:[#allocation5 + $0x7f0] sm:$0xff] }
  0x67   :  { %1113 = vmatpush3.msra.mxu1 %v233_v19  ;;  %1079 = vmatprep.subr.mxu0 %v216_v20  ;;  %v266_v18 = vld [vmem:[#allocation5 + $0x670] sm:$0xff]  ;;  %v281_v20 = vld [vmem:[#allocation5 + $0x6e8] sm:$0xff] }
  0x68   :  { %1114 = vmatprep.subr.mxu1 %v248_v21  ;;  %1080 = vmatpush3.msra.mxu0 %v200_v22  ;;  %v298_v19 = vld [vmem:[#allocation5 + $0x770] sm:$0xff]  ;;  %v313_v21 = vld [vmem:[#allocation5 + $0x7e8] sm:$0xff] }
  0x69   :  { %1115 = vmatpush3.msra.mxu1 %v232_v23  ;;  %1081 = vmatprep.subr.mxu0 %v215_v24  ;;  %v265_v22 = vld [vmem:[#allocation5 + $0x668] sm:$0xff]  ;;  %v280_v24 = vld [vmem:[#allocation5 + $0x6e0] sm:$0xff] }
  0x6a   :  { %1116 = vmatprep.subr.mxu1 %v247_v25  ;;  %1082 = vmatpush3.msra.mxu0 %v199_v26  ;;  %v297_v23 = vld [vmem:[#allocation5 + $0x768] sm:$0xff]  ;;  %v312_v25 = vld [vmem:[#allocation5 + $0x7e0] sm:$0xff] }
  0x6b   :  { %1117 = vmatpush3.msra.mxu1 %v231_v27  ;;  %1083 = vmatprep.subr.mxu0 %v214_v28  ;;  %v264_v26 = vld [vmem:[#allocation5 + $0x660] sm:$0xff]  ;;  %v279_v28 = vld [vmem:[#allocation5 + $0x6d8] sm:$0xff] }
  0x6c   :  { %1118 = vmatprep.subr.mxu1 %v246_v29  ;;  %1084 = vmatpush3.msra.mxu0 %v198_v30  ;;  %v296_v27 = vld [vmem:[#allocation5 + $0x760] sm:$0xff]  ;;  %v311_v29 = vld [vmem:[#allocation5 + $0x7d8] sm:$0xff] }
  0x6d   :  { %1119 = vmatpush3.msra.mxu1 %v230_v31  ;;  %1085 = vmatprep.subr.mxu0 %v213_v32  ;;  %v263_v30 = vld [vmem:[#allocation5 + $0x658] sm:$0xff]  ;;  %v278_v32 = vld [vmem:[#allocation5 + $0x6d0] sm:$0xff] }
  0x6e   :  { %1120 = vmatprep.subr.mxu1 %v245_v33  ;;  %1086 = vmatpush3.msra.mxu0 %v197_v34  ;;  %v295_v31 = vld [vmem:[#allocation5 + $0x758] sm:$0xff]  ;;  %v310_v33 = vld [vmem:[#allocation5 + $0x7d0] sm:$0xff] }
  0x6f   :  { %1121 = vmatpush3.msra.mxu1 %v229_v35  ;;  %1087 = vmatprep.subr.mxu0 %v212_v36  ;;  %v262_v34 = vld [vmem:[#allocation5 + $0x650] sm:$0xff]  ;;  %v277_v36 = vld [vmem:[#allocation5 + $0x6c8] sm:$0xff] }
  0x70   :  { %1122 = vmatprep.subr.mxu1 %v244_v37  ;;  %1088 = vmatpush3.msra.mxu0 %v196_v38  ;;  %v294_v35 = vld [vmem:[#allocation5 + $0x750] sm:$0xff]  ;;  %v309_v37 = vld [vmem:[#allocation5 + $0x7c8] sm:$0xff] }
  0x71   :  { %1123 = vmatpush3.msra.mxu1 %v228_v39  ;;  %1089 = vmatprep.subr.mxu0 %v211_v40  ;;  %v261_v38 = vld [vmem:[#allocation5 + $0x648] sm:$0xff]  ;;  %v276_v40 = vld [vmem:[#allocation5 + $0x6c0] sm:$0xff] }
  0x72   :  { %1124 = vmatprep.subr.mxu1 %v243_v41  ;;  %1090 = vmatpush3.msra.mxu0 %v195_v42  ;;  %v293_v39 = vld [vmem:[#allocation5 + $0x748] sm:$0xff]  ;;  %v308_v41 = vld [vmem:[#allocation5 + $0x7c0] sm:$0xff] }
  0x73   :  { %1125 = vmatpush3.msra.mxu1 %v227_v43  ;;  %1091 = vmatprep.subr.mxu0 %v210_v44  ;;  %v260_v42 = vld [vmem:[#allocation5 + $0x640] sm:$0xff]  ;;  %v275_v44 = vld [vmem:[#allocation5 + $0x6b8] sm:$0xff] }
  0x74   :  { %1126 = vmatprep.subr.mxu1 %v242_v45  ;;  %1092 = vmatpush3.msra.mxu0 %v194_v46  ;;  %v292_v43 = vld [vmem:[#allocation5 + $0x740] sm:$0xff]  ;;  %v307_v45 = vld [vmem:[#allocation5 + $0x7b8] sm:$0xff] }
  0x75   :  { %1127 = vmatpush3.msra.mxu1 %v226_v47  ;;  %1093 = vmatprep.subr.mxu0 %v209_v48  ;;  %v259_v46 = vld [vmem:[#allocation5 + $0x638] sm:$0xff]  ;;  %v274_v48 = vld [vmem:[#allocation5 + $0x6b0] sm:$0xff] }
  0x76   :  { %1128 = vmatprep.subr.mxu1 %v241_v49  ;;  %1094 = vmatpush3.msra.mxu0 %v193_v50  ;;  %v291_v47 = vld [vmem:[#allocation5 + $0x738] sm:$0xff]  ;;  %v306_v49 = vld [vmem:[#allocation5 + $0x7b0] sm:$0xff] }
  0x77   :  { %1129 = vmatpush3.msra.mxu1 %v225_v51  ;;  %1095 = vmatprep.subr.mxu0 %v208_v52  ;;  %v258_v50 = vld [vmem:[#allocation5 + $0x630] sm:$0xff]  ;;  %v273_v52 = vld [vmem:[#allocation5 + $0x6a8] sm:$0xff] }
  0x78   :  { %1130 = vmatprep.subr.mxu1 %v240_v53  ;;  %1096 = vmatpush3.msra.mxu0 %v192_v54  ;;  %v290_v51 = vld [vmem:[#allocation5 + $0x730] sm:$0xff]  ;;  %v305_v53 = vld [vmem:[#allocation5 + $0x7a8] sm:$0xff] }
  0x79   :  { %1131 = vmatpush3.msra.mxu1 %v224_v55  ;;  %1097 = vmatprep.subr.mxu0 %v207_v56  ;;  %v257_v54 = vld [vmem:[#allocation5 + $0x628] sm:$0xff]  ;;  %v272_v56 = vld [vmem:[#allocation5 + $0x6a0] sm:$0xff] }
  0x7a   :  { %1132 = vmatprep.subr.mxu1 %v239_v57  ;;  %1098 = vmatpush3.msra.mxu0 %v191_v58  ;;  %v289_v55 = vld [vmem:[#allocation5 + $0x728] sm:$0xff]  ;;  %v304_v57 = vld [vmem:[#allocation5 + $0x7a0] sm:$0xff] }
  0x7b   :  { %1133 = vmatpush3.msra.mxu1 %v223_v59  ;;  %1099 = vmatprep.subr.mxu0 %v206_v60  ;;  %v256_v58 = vld [vmem:[#allocation5 + $0x620] sm:$0xff]  ;;  %v271_v60 = vld [vmem:[#allocation5 + $0x698] sm:$0xff] }
  0x7c   :  { %1134 = vmatprep.subr.mxu1 %v238_v61  ;;  %1100 = vmatpush3.msra.mxu0 %v190_v62  ;;  %v288_v59 = vld [vmem:[#allocation5 + $0x720] sm:$0xff]  ;;  %v303_v61 = vld [vmem:[#allocation5 + $0x798] sm:$0xff] }
  0x7d   :  { %1135 = vmatpush3.msra.mxu1 %v222_v63  ;;  %1101 = vmatprep.subr.mxu0 %v205_v0  ;;  %v255_v62 = vld [vmem:[#allocation5 + $0x618] sm:$0xff]  ;;  %v270_v0 = vld [vmem:[#allocation5 + $0x690] sm:$0xff] }
  0x7e   :  { %1136 = vmatprep.subr.mxu1 %v237_v1  ;;  %1102 = vmatpush3.msra.mxu0 %v189_v2  ;;  %v287_v63 = vld [vmem:[#allocation5 + $0x718] sm:$0xff]  ;;  %v302_v1 = vld [vmem:[#allocation5 + $0x790] sm:$0xff] }
  0x7f   :  { %1137 = vmatpush3.msra.mxu1 %v221_v3  ;;  %1103 = vmatprep.subr.mxu0 %v204_v4  ;;  %v254_v2 = vld [vmem:[#allocation5 + $0x610] sm:$0xff]  ;;  %v269_v4 = vld [vmem:[#allocation5 + $0x688] sm:$0xff] }
  0x80   :  { %1138 = vmatprep.subr.mxu1 %v236_v5  ;;  %1104 = vmatpush3.msra.mxu0 %v188_v6  ;;  %v286_v3 = vld [vmem:[#allocation5 + $0x710] sm:$0xff]  ;;  %v301_v5 = vld [vmem:[#allocation5 + $0x788] sm:$0xff] }
  0x81   :  { %667 = vmatprep.mubr.f32.mxu0 %v53_v7  ;;  %1139 = vmatpush3.msra.mxu1 %v220_v8  ;;  %v253_v6 = vld [vmem:[#allocation5 + $0x608] sm:$0xff]  ;;  %v268_v8 = vld [vmem:[#allocation5 + $0x680] sm:$0xff] }
  0x82   :  { %668 = vmatmul.mubr.f32.vlgmr.msra.gmra.mxu0 %v52_v9  ;;  %737 = vmatprep.mubr.f32.mxu1 %v55_v10  ;;  %v285_v7 = vld [vmem:[#allocation5 + $0x708] sm:$0xff]  ;;  %v300_v9 = vld [vmem:[#allocation5 + $0x780] sm:$0xff] }
  0x83   :  { %1143 = vmatprep.subr.mxu0 %v283_v11  ;;  %1178 = vmatprep.subr.mxu1 %v315_v12  ;;  %v252_v10 = vld [vmem:[#allocation5 + $0x600] sm:$0xff]  ;;  %v57_v11 = vld [vmem:[#allocation2 + $0x68] sm:$0xff] }
  0x84   :  { %738 = vmatmul.mubr.f32.vlgmr.msra.gmra.mxu1 %v54_v13  ;;  %1144 = vmatpush3.msra.mxu0 %v267_v14  ;;  %v284_v12 = vld [vmem:[#allocation5 + $0x700] sm:$0xff]  ;;  %v59_v13 = vld [vmem:[#allocation2 + $0x78] sm:$0xff] }
  0x85   :  { %1179 = vmatpush3.msra.mxu1 %v299_v15  ;;  %1145 = vmatprep.subr.mxu0 %v282_v16  ;;  %v56_v14 = vld [vmem:[#allocation2 + $0x60] sm:$0xff]  ;;  %v58_v15 = vld [vmem:[#allocation2 + $0x70] sm:$0xff] }
  0x86   :  { %1180 = vmatprep.subr.mxu1 %v314_v17  ;;  %1146 = vmatpush3.msra.mxu0 %v266_v18 }
  0x87   :  { %1181 = vmatpush3.msra.mxu1 %v298_v19  ;;  %1147 = vmatprep.subr.mxu0 %v281_v20 }
  0x88   :  { %1182 = vmatprep.subr.mxu1 %v313_v21  ;;  %1148 = vmatpush3.msra.mxu0 %v265_v22  ;;  %v932_v21 = vld [vmem:[%s1355_s2] ss:$0 sm:$0xff]  ;;  %s1311_s2 = smov [#allocation7]  }
  0x89   :  { %1183 = vmatpush3.msra.mxu1 %v297_v23  ;;  %1149 = vmatprep.subr.mxu0 %v280_v24  ;;  %s908_s27 = sshll.u32 %s1311_s2, 4  ;;  %s909_s27 = int_to_ptr.vmem [resolvable:$true] %s908_s27 }
  0x8a   :  { %1184 = vmatprep.subr.mxu1 %v312_v25  ;;  %1150 = vmatpush3.msra.mxu0 %v264_v26  ;;  %s1259_s28 = scalar_lea.vmem %s909_s27, 128  ;;  %p1264_p11 = scmp.lt.s32.totalorder %s909_s27, %s909_s27 }
  0x8b   :  { %1185 = vmatpush3.msra.mxu1 %v296_v27  ;;  %1151 = vmatprep.subr.mxu0 %v279_v28  ;;  %p1260_p10 = scmp.ne.s32.totalorder %s909_s27, %s1259_s28  ;;  %p1265_p12 = scmp.lt.s32.totalorder %s1259_s28, %s1259_s28 }
  0x8c   :  { %1186 = vmatprep.subr.mxu1 %v311_v29  ;;  %1152 = vmatpush3.msra.mxu0 %v263_v30 }
  0x8d   :  { %1187 = vmatpush3.msra.mxu1 %v295_v31  ;;  %1153 = vmatprep.subr.mxu0 %v278_v32  ;;  %p1266_p13 = por %p1265_p12, %p1264_p11 }
  0x8e   :  { %1188 = vmatprep.subr.mxu1 %v310_v33  ;;  %1154 = vmatpush3.msra.mxu0 %v262_v34 }
  0x8f   :  { %1189 = vmatpush3.msra.mxu1 %v294_v35  ;;  %1155 = vmatprep.subr.mxu0 %v277_v36  ;;  %p1267_p0 = pnand %p1266_p13, %p1260_p10 }
  0x90   :  { %1190 = vmatprep.subr.mxu1 %v309_v37  ;;  %1156 = vmatpush3.msra.mxu0 %v261_v38 }
  0x91   :  { %1191 = vmatpush3.msra.mxu1 %v293_v39  ;;  %1157 = vmatprep.subr.mxu0 %v276_v40 }
  0x92   :  { %1192 = vmatprep.subr.mxu1 %v308_v41  ;;  %1158 = vmatpush3.msra.mxu0 %v260_v42 }
  0x93   :  { %1193 = vmatpush3.msra.mxu1 %v292_v43  ;;  %1159 = vmatprep.subr.mxu0 %v275_v44 }
  0x94   :  { %1194 = vmatprep.subr.mxu1 %v307_v45  ;;  %1160 = vmatpush3.msra.mxu0 %v259_v46 }
  0x95   :  { %1195 = vmatpush3.msra.mxu1 %v291_v47  ;;  %1161 = vmatprep.subr.mxu0 %v274_v48 }
  0x96   :  { %1196 = vmatprep.subr.mxu1 %v306_v49  ;;  %1162 = vmatpush3.msra.mxu0 %v258_v50 }
  0x97   :  { %1197 = vmatpush3.msra.mxu1 %v290_v51  ;;  %1163 = vmatprep.subr.mxu0 %v273_v52 }
  0x98   :  { %1198 = vmatprep.subr.mxu1 %v305_v53  ;;  %1164 = vmatpush3.msra.mxu0 %v257_v54 }
  0x99   :  { %1199 = vmatpush3.msra.mxu1 %v289_v55  ;;  %1165 = vmatprep.subr.mxu0 %v272_v56 }
  0x9a   :  { %1200 = vmatprep.subr.mxu1 %v304_v57  ;;  %1166 = vmatpush3.msra.mxu0 %v256_v58 }
  0x9b   :  { %1201 = vmatpush3.msra.mxu1 %v288_v59  ;;  %1167 = vmatprep.subr.mxu0 %v271_v60 }
  0x9c   :  { %1202 = vmatprep.subr.mxu1 %v303_v61  ;;  %1168 = vmatpush3.msra.mxu0 %v255_v62 }
  0x9d   :  { %1203 = vmatpush3.msra.mxu1 %v287_v63  ;;  %1169 = vmatprep.subr.mxu0 %v270_v0 }
  0x9e   :  { %1204 = vmatprep.subr.mxu1 %v302_v1  ;;  %1170 = vmatpush3.msra.mxu0 %v254_v2 }
  0x9f   :  { %1205 = vmatpush3.msra.mxu1 %v286_v3  ;;  %1171 = vmatprep.subr.mxu0 %v269_v4 }
  0xa0   :  { %1206 = vmatprep.subr.mxu1 %v301_v5  ;;  %1172 = vmatpush3.msra.mxu0 %v253_v6 }
  0xa1   :  { %1207 = vmatpush3.msra.mxu1 %v285_v7  ;;  %1173 = vmatprep.subr.mxu0 %v268_v8 }
  0xa2   :  { %1208 = vmatprep.subr.mxu1 %v300_v9  ;;  %1174 = vmatpush3.msra.mxu0 %v252_v10 }
  0xa3   :  { %807 = vmatprep.mubr.f32.mxu0 %v57_v11  ;;  %1209 = vmatpush3.msra.mxu1 %v284_v12 }
  0xa4   :  { %877 = vmatprep.mubr.f32.mxu1 %v59_v13  ;;  %808 = vmatmul.mubr.f32.vlgmr.msra.gmra.mxu0 %v56_v14 }
  0xa5   :  { %878 = vmatmul.mubr.f32.vlgmr.msra.gmra.mxu1 %v58_v15 }
  0xfe   :  { %v965_v16 = vpop.f32.mrf.mxu0 }
 0x100   :  { %v1000_v17 = vpop.f32.mrf.mxu1  ;;  %v966_v18 = vpop.f32.mrf.mxu0 }
 0x101   :  { %v967_v20 = vadd.f32 %v966_v18, %v965_v16 }
 0x102   :  { %v1001_v22 = vpop.f32.mrf.mxu1 }
 0x103   :  { %v390_v25 = vadd.f32 %v967_v20, %v932_v21  ;;  %v1002_v26 = vadd.f32 %v1001_v22, %v1000_v17 }
 0x105   :  { %v460_v30 = vadd.f32 %v1002_v26, %v390_v25 }
 0x120   :  { %v1035_v19 = vpop.f32.mrf.mxu0 }
 0x122   :  { %v1070_v23 = vpop.f32.mrf.mxu1  ;;  %v1036_v24 = vpop.f32.mrf.mxu0 }
 0x123   :  { %v1037_v28 = vadd.f32 %v1036_v24, %v1035_v19 }
 0x124   :  { %v1071_v29 = vpop.f32.mrf.mxu1 }
 0x125   :  { %v530_v33 = vadd.f32 %v1037_v28, %v460_v30  ;;  %v1072_v34 = vadd.f32 %v1071_v29, %v1070_v23 }
 0x127   :  { %v600_v37 = vadd.f32 %v1072_v34, %v530_v33 }
 0x142   :  { %v1105_v27 = vpop.f32.mrf.mxu0 }
 0x144   :  { %v1140_v31 = vpop.f32.mrf.mxu1  ;;  %v1106_v32 = vpop.f32.mrf.mxu0 }
 0x145   :  { %v1107_v35 = vadd.f32 %v1106_v32, %v1105_v27 }
 0x146   :  { %v1141_v36 = vpop.f32.mrf.mxu1 }
 0x147   :  { %v670_v38 = vadd.f32 %v1107_v35, %v600_v37  ;;  %v1142_v39 = vadd.f32 %v1141_v36, %v1140_v31 }
 0x149   :  { %v740_v44 = vadd.f32 %v1142_v39, %v670_v38 }
 0x164   :  { %v1175_v40 = vpop.f32.mrf.mxu0 }
 0x165   :  { %v1210_v41 = vpop.f32.mrf.mxu1 }
 0x166   :  { %v1176_v42 = vpop.f32.mrf.mxu0 }
 0x167   :  { %v1211_v43 = vpop.f32.mrf.mxu1  ;;  %v1177_v45 = vadd.f32 %v1176_v42, %v1175_v40 }
 0x168   :  { %v1212_v47 = vadd.f32 %v1211_v43, %v1210_v41 }
 0x169   :  { %v810_v46 = vadd.f32 %v1177_v45, %v740_v44 }
 0x16b   :  { %v880_v48 = vadd.f32 %v1212_v47, %v810_v46 }
 0x16d   :  { %v884_v49 = vrot.slane %v880_v48, 4  ;;  %v890_v50 = vmul.f32 %v880_v48, %v880_v48  ;;  %883 = vst [vmem:[#allocation7] sm:$0xff] %v880_v48 }
 0x16e   :  { %1270 = shalt.err (!%p1267_p0)
}
 0x16f   :  { %911 = dma.vmem_to_hbm [thread:$0]  %s909_s27, 128, %s1356_s3, [#allocation4]   ;;  %v885_v51 = vadd.f32 %v884_v49, %v880_v48  ;;  %v891_v52 = vrot.slane %v890_v50, 4  ;;  %vm897_vm0 = vcmask 1040384   ;;  %vm899_vm1 = vcmask 1041408  }
 0x170   :  { %s1312_s5 = smov [#allocation8]  }
 0x171   :  { %v886_v53 = vrot.slane %v885_v51, 2  ;;  %v892_v54 = vadd.f32 %v891_v52, %v890_v50  ;;  %s918_s6 = sshll.u32 %s1312_s5, 4  ;;  %s919_s6 = int_to_ptr.vmem [resolvable:$true] %s918_s6 }
 0x172   :  { %s1279_s3 = scalar_lea.vmem %s919_s6, 128  ;;  %p1284_p2 = scmp.lt.s32.totalorder %s919_s6, %s919_s6 }
 0x173   :  { %v887_v55 = vadd.f32 %v886_v53, %v885_v51  ;;  %v893_v56 = vrot.slane %v892_v54, 2  ;;  %p1280_p1 = scmp.ne.s32.totalorder %s919_s6, %s1279_s3  ;;  %p1285_p3 = scmp.lt.s32.totalorder %s1279_s3, %s1279_s3 }
 0x175   :  { %v888_v57 = vrot.slane %v887_v55, 1  ;;  %v894_v58 = vadd.f32 %v893_v56, %v892_v54  ;;  %p1286_p4 = por %p1285_p3, %p1284_p2 }
 0x177   :  { %v895_v59 = vrot.slane %v894_v58, 1  ;;  %v889_v60 = vadd.f32 %v888_v57, %v887_v55  ;;  %p1287_p5 = pnand %p1286_p4, %p1280_p1 }
 0x179   :  { %v896_v61 = vadd.f32 %v895_v59, %v894_v58 }
 0x17b   :  { %v898_v62 = vsel %vm897_vm0, %v889_v60, %v896_v61 }
 0x17c   :  { %v900_v63 = vsel %vm899_vm1, %v898_v62, 0.0 }
 0x17d   :  { %901 = vst [vmem:[#allocation8] sm:$0xff] %v900_v63 }
 0x17e   :  { %1290 = shalt.err (!%p1287_p5)
}
 0x17f   :  { %921 = dma.vmem_to_hbm [thread:$0]  %s919_s6, 128, %s1357_s4, [#allocation9]  }
 0x180   :  { %1303 = dma.done.wait [#allocation4], 128  }
 0x181   :  { %1304 = vsyncadd [#allocation4], 4294967168 }
 0x182   :  { %1305 = dma.done.wait [#allocation9], 128  }
 0x183   :  { %1306 = vsyncadd [#allocation9], 4294967168 }
 0x184   :  { %928 = vsyncpa [#allocation3], 1 }
 0x185   :  { %929 = vsyncpa [#allocation6], 1 }
 0x186   :  { %930 = vsyncpa [#allocation4], 1 }
 0x187   :  { %931 = vsyncpa [#allocation9], 1 }

</bundles_post_ra>
